<compile_context>
chip_gen: v7x
topology: tpu7x:2x2x1
jax: 0.10.0
libtpu: 0.0.40
codegen_flags: <defaults>
</compile_context>

<pallas_src>
import functools

import jax
import jax.numpy as jnp
from jax.experimental import pallas as pl
from jax.experimental.pallas import tpu as pltpu


def _round_up(x, m):
    return ((x + m - 1) // m) * m


def _cdiv(a, b):
    return (a + b - 1) // b


@functools.lru_cache(maxsize=None)
def _vmem_budget_bytes():
    """~75% of per-core VMEM (headroom for compiler scratch / semaphores)."""
    cap = 64 * 1024 * 1024                       # conservative default (v7x per-TC)
    try:
        info = pltpu.get_tpu_info()
        cap = int(getattr(info, "vmem_capacity_bytes", cap) or cap)
    except Exception:
        pass
    return int(cap * 3 // 4)


# ----------------------------------------------------------------------------- kernels
def _swiglu_resident_kernel(x_ref, wgu_ref, wd_ref, o_ref, *, i_pad):
    # x_ref:  (tm, Hp)      activation rows, original dtype (cast here, hidden under MXU)
    # wgu_ref:(Hp, 2*Ip)    fused [gate | up] weight, resident in VMEM
    # wd_ref: (Ip, Hp)      down_proj weight, resident in VMEM
    # o_ref:  (tm, Hp)
    x = x_ref[...].astype(wgu_ref.dtype)
    gu = jnp.dot(x, wgu_ref[...], preferred_element_type=jnp.float32)   # one wide matmul
    g = gu[:, :i_pad]
    u = gu[:, i_pad:]
    h = (g * jax.nn.sigmoid(g)) * u                                      # SiLU(g)*u in f32
    o_ref[...] = jnp.dot(h.astype(wd_ref.dtype), wd_ref[...],
                         preferred_element_type=jnp.float32).astype(o_ref.dtype)


def _swiglu_streamed_kernel(x_ref, wg_ref, wu_ref, wd_ref, o_ref, acc_ref):
    # Fallback when weights do not fit VMEM: I tiled along grid axis 1 (last), f32
    # accumulator holds the partial down-projection across it.
    k = pl.program_id(1)

    @pl.when(k == 0)
    def _():
        acc_ref[...] = jnp.zeros_like(acc_ref)

    x = x_ref[...].astype(wg_ref.dtype)
    g = jnp.dot(x, wg_ref[...], preferred_element_type=jnp.float32)
    u = jnp.dot(x, wu_ref[...], preferred_element_type=jnp.float32)
    h = (g * jax.nn.sigmoid(g)) * u
    acc_ref[...] += jnp.dot(h.astype(wd_ref.dtype), wd_ref[...],
                            preferred_element_type=jnp.float32)

    @pl.when(k == pl.num_programs(1) - 1)
    def _():
        o_ref[...] = acc_ref[...].astype(o_ref.dtype)


# ------------------------------------------------------------------------ param prep
def prepare_params(w_gate, w_up, w_down, compute_dtype=jnp.bfloat16):
    """One-time (param-load) weight prep.

    PyTorch nn.Linear layout: w_gate, w_up: (I, H); w_down: (H, I).
    Returns:
      w_gu: (H_pad, 2*I_pad)  columns [0,I_pad)=gate_proj.T, [I_pad,2*I_pad)=up_proj.T
      w_d : (I_pad, H_pad)    down_proj.T
    padded to lane multiples of 128 and cast to `compute_dtype` for the MXU.
    """
    I, H = w_gate.shape
    H_pad = _round_up(H, 128)
    I_pad = _round_up(I, 128)

    def pad_t(w):   # (I, H) -> (H_pad, I_pad)
        return jnp.pad(w.T.astype(compute_dtype), ((0, H_pad - H), (0, I_pad - I)))

    w_gu = jnp.concatenate([pad_t(w_gate), pad_t(w_up)], axis=1)
    w_d = jnp.pad(w_down.T.astype(compute_dtype), ((0, I_pad - I), (0, H_pad - H)))
    return w_gu, w_d


# --------------------------------------------------------------------------- wrapper
@functools.partial(jax.jit, static_argnames=("row_tile",))
def time_moe_temporal_block(x, w_gu, w_d, *, row_tile=512):
    """x: (B, S, H); w_gu: (H_pad, 2*I_pad); w_d: (I_pad, H_pad)  (see prepare_params)."""
    B, S, H = x.shape
    I_pad, H_pad = w_d.shape
    assert w_gu.shape == (H_pad, 2 * I_pad)
    out_dtype = x.dtype
    x_b = jnp.dtype(x.dtype).itemsize
    o_b = jnp.dtype(out_dtype).itemsize
    w_b = jnp.dtype(w_gu.dtype).itemsize

    M = B * S
    budget = _vmem_budget_bytes()

    # ---- row tile: large by default, capped for tiny M, >=2 tiles for v7x megacore ----
    tm = min(row_tile, _round_up(M, 8))
    if M > 8 and _cdiv(M, tm) < 2:
        tm = max(8, _round_up(_cdiv(M, 2), 8))

    # ---- VMEM footprint model (resident-weight path) -----------------------------
    weight_bytes = (H_pad * 2 * I_pad + I_pad * H_pad) * w_b

    def resident_bytes(t, w_copies):
        io = 2 * t * H_pad * x_b + 2 * t * H_pad * o_b                   # dbl-buf x / out
        tmp = t * (2 * I_pad * 4 + I_pad * 4 + I_pad * w_b + H_pad * 4)  # gu, h, h_cast, f32 out
        return w_copies * weight_bytes + io + tmp

    # ---- choose path: resident weights (default) vs I-streaming fallback ----------
    resident = False
    t = tm
    while True:
        if resident_bytes(t, 1) <= budget:
            resident, tm = True, t
            break
        if t <= 8:
            break
        t = max(8, _round_up(t // 2, 8))

    # ---- activations: reshape; pad the lane dim only if H is not 128-aligned ------
    # (keep original dtype; the bf16 cast happens per-tile inside the kernel)
    x2d = x.reshape(M, H)
    if H != H_pad:
        x2d = jnp.pad(x2d, ((0, 0), (0, H_pad - H)))   # zero cols: benign under matmul

    flops = int(2 * M * H_pad * I_pad * 3)

    if resident:
        # Single-buffer the (constant-index) weight blocks only when double-buffering
        # them would not fit the budget; otherwise stay on the default pipeline path.
        single_buf_w = resident_bytes(tm, 2) > budget
        w_kwargs = {"pipeline_mode": pl.Buffered(1)} if single_buf_w else {}
        n_row_tiles = _cdiv(M, tm)
        cost = pl.CostEstimate(
            flops=flops, transcendentals=int(M * I_pad),
            bytes_accessed=int(M * H_pad * (x_b + o_b) + weight_bytes))
        out2d = pl.pallas_call(
            functools.partial(_swiglu_resident_kernel, i_pad=I_pad),
            out_shape=jax.ShapeDtypeStruct((M, H_pad), out_dtype),
            grid_spec=pltpu.PrefetchScalarGridSpec(
                num_scalar_prefetch=0,
                grid=(n_row_tiles,),
                in_specs=[
                    pl.BlockSpec((tm, H_pad), lambda i: (i, 0)),                 # x rows
                    pl.BlockSpec((H_pad, 2 * I_pad), lambda i: (0, 0), **w_kwargs),  # gate|up
                    pl.BlockSpec((I_pad, H_pad), lambda i: (0, 0), **w_kwargs),      # down
                ],
                out_specs=pl.BlockSpec((tm, H_pad), lambda i: (i, 0)),
            ),
            compiler_params=pltpu.CompilerParams(
                dimension_semantics=("parallel",),
                vmem_limit_bytes=budget),
            cost_estimate=cost,
        )(x2d, w_gu, w_d)
    else:
        # Streaming fallback: weights re-fetched per row tile, so use a large row tile
        # (toward the compute/HBM break-even) and 256-aligned I slabs.
        tile_i = 512 if I_pad % 512 == 0 else (256 if I_pad % 256 == 0 else 128)

        def streamed_bytes(t, ti):
            io = 2 * t * H_pad * x_b + 2 * t * H_pad * o_b
            wb = 2 * (2 * H_pad * ti + ti * H_pad) * w_b          # dbl-buffered slabs
            acc = t * H_pad * 4
            tmp = t * (2 * ti * 4 + ti * w_b + H_pad * 4)
            return io + wb + acc + tmp

        tm = min(max(row_tile, 1024), _round_up(M, 8))
        if M > 8 and _cdiv(M, tm) < 2:
            tm = max(8, _round_up(_cdiv(M, 2), 8))
        while tm > 8 and streamed_bytes(tm, tile_i) > budget:
            tm = max(8, _round_up(tm // 2, 8))

        n_row_tiles = _cdiv(M, tm)
        up_off = I_pad // tile_i          # up_proj columns start at block index I_pad/tile_i
        cost = pl.CostEstimate(
            flops=flops, transcendentals=int(M * I_pad),
            bytes_accessed=int(M * H_pad * (x_b + o_b) + n_row_tiles * weight_bytes))
        out2d = pl.pallas_call(
            _swiglu_streamed_kernel,
            out_shape=jax.ShapeDtypeStruct((M, H_pad), out_dtype),
            grid_spec=pltpu.PrefetchScalarGridSpec(
                num_scalar_prefetch=0,
                grid=(n_row_tiles, I_pad // tile_i),
                in_specs=[
                    pl.BlockSpec((tm, H_pad), lambda i, k: (i, 0)),               # x rows
                    pl.BlockSpec((H_pad, tile_i), lambda i, k: (0, k)),            # gate slab
                    pl.BlockSpec((H_pad, tile_i),
                                 lambda i, k, off=up_off: (0, k + off)),           # up slab
                    pl.BlockSpec((tile_i, H_pad), lambda i, k: (k, 0)),            # down slab
                ],
                out_specs=pl.BlockSpec((tm, H_pad), lambda i, k: (i, 0)),
                scratch_shapes=[pltpu.VMEM((tm, H_pad), jnp.float32)],
            ),
            compiler_params=pltpu.CompilerParams(
                dimension_semantics=("parallel", "arbitrary"),
                vmem_limit_bytes=budget),
            cost_estimate=cost,
        )(x2d, w_gu, w_gu, w_d)

    return out2d[:, :H].reshape(B, S, H)


def _reference(x, w_gate, w_up, w_down):
    g = x @ w_gate.T
    u = x @ w_up.T
    return (jax.nn.silu(g) * u) @ w_down.T


if __name__ == "__main__":
    hidden_size = 32
    intermediate_size = 64
    batch, seq = 2, 8

    key = jax.random.PRNGKey(0)
    kx, kg, ku, kd = jax.random.split(key, 4)

    x = jax.random.normal(kx, (batch, seq, hidden_size), dtype=jnp.float32)

    # PyTorch Linear layout: (out_features, in_features), uniform(-1/sqrt(fan_in), ...).
    bound_g = 1.0 / (hidden_size ** 0.5)
    bound_d = 1.0 / (intermediate_size ** 0.5)
    w_gate = jax.random.uniform(kg, (intermediate_size, hidden_size),
                                minval=-bound_g, maxval=bound_g, dtype=jnp.float32)
    w_up = jax.random.uniform(ku, (intermediate_size, hidden_size),
                              minval=-bound_g, maxval=bound_g, dtype=jnp.float32)
    w_down = jax.random.uniform(kd, (hidden_size, intermediate_size),
                                minval=-bound_d, maxval=bound_d, dtype=jnp.float32)

    # One-time weight prep (transpose, pad, fuse gate|up, cast for the MXU).
    w_gu, w_d = prepare_params(w_gate, w_up, w_down)
    out = time_moe_temporal_block(x, w_gu, w_d)
    out = jax.block_until_ready(out)

    ref = _reference(x, w_gate, w_up, w_down)
    assert out.shape == (batch, seq, hidden_size)
    # bf16 MXU operands with f32 accumulation -> relaxed tolerance vs the f32 reference.
    assert jnp.allclose(out, ref, atol=3e-2, rtol=3e-2), "mismatch vs reference"

    print("KERNEL_OK")
</pallas_src>

<mosaic_0001>
module attributes {stable_mosaic.version = 11 : i64} {
  func.func @_swiglu_resident_kernel(%arg0: i32, %arg1: memref<8x128xf32, #tpu.memory_space<vmem>>, %arg2: memref<128x256xbf16, #tpu.memory_space<vmem>>, %arg3: memref<128x128xbf16, #tpu.memory_space<vmem>>, %arg4: memref<8x128xf32, #tpu.memory_space<vmem>>) attributes {dimension_semantics = [#tpu.dimension_semantics<parallel>], iteration_bounds = array<i64: 2>, scalar_prefetch = 0 : i64, scratch_operands = 0 : i64, tpu.core_type = #tpu.core_type<tc>, window_params = [{transform_indices = @transform_0, window_bounds = array<i64: 8, 128>}, {pipeline_mode = #tpu.pipeline_mode<synchronous>, transform_indices = @transform_1, window_bounds = array<i64: 128, 256>}, {pipeline_mode = #tpu.pipeline_mode<synchronous>, transform_indices = @transform_2, window_bounds = array<i64: 128, 128>}, {transform_indices = @transform_3, window_bounds = array<i64: 8, 128>}]} {
    %c0 = arith.constant 0 : index
    %c0_0 = arith.constant 0 : index
    %0 = vector.load %arg1[%c0, %c0_0] : memref<8x128xf32, #tpu.memory_space<vmem>>, vector<8x128xf32>
    %1 = arith.truncf %0 : vector<8x128xf32> to vector<8x128xbf16>
    %c0_1 = arith.constant 0 : index
    %c0_2 = arith.constant 0 : index
    %2 = vector.load %arg2[%c0_1, %c0_2] : memref<128x256xbf16, #tpu.memory_space<vmem>>, vector<128x256xbf16>
    %cst = arith.constant dense<0.000000e+00> : vector<8x256xf32>
    %3 = tpu.matmul %1, %2, %cst {dimension_numbers = #tpu.dot_dimension_numbers<[1], [0], [0], [1], [0, 0, 1, 1], [], []>} : vector<8x128xbf16>, vector<128x256xbf16>, vector<8x256xf32> -> vector<8x256xf32>
    %4 = vector.extract_strided_slice %3 {offsets = [0, 0], sizes = [8, 128], strides = [1, 1]} : vector<8x256xf32> to vector<8x128xf32>
    %5 = vector.extract_strided_slice %3 {offsets = [0, 128], sizes = [8, 128], strides = [1, 1]} : vector<8x256xf32> to vector<8x128xf32>
    %6 = arith.negf %4 : vector<8x128xf32>
    %7 = math.exp %6 : vector<8x128xf32>
    %cst_3 = arith.constant 1.000000e+00 : f32
    %8 = vector.broadcast %cst_3 : f32 to vector<8x128xf32>
    %9 = arith.addf %8, %7 : vector<8x128xf32>
    %10 = arith.divf %8, %9 : vector<8x128xf32>
    %11 = arith.mulf %4, %10 : vector<8x128xf32>
    %12 = arith.mulf %11, %5 : vector<8x128xf32>
    %13 = arith.truncf %12 : vector<8x128xf32> to vector<8x128xbf16>
    %c0_4 = arith.constant 0 : index
    %c0_5 = arith.constant 0 : index
    %14 = vector.load %arg3[%c0_4, %c0_5] : memref<128x128xbf16, #tpu.memory_space<vmem>>, vector<128x128xbf16>
    %cst_6 = arith.constant dense<0.000000e+00> : vector<8x128xf32>
    %15 = tpu.matmul %13, %14, %cst_6 {dimension_numbers = #tpu.dot_dimension_numbers<[1], [0], [0], [1], [0, 0, 1, 1], [], []>} : vector<8x128xbf16>, vector<128x128xbf16>, vector<8x128xf32> -> vector<8x128xf32>
    %c0_7 = arith.constant 0 : index
    %c0_8 = arith.constant 0 : index
    %16 = vector.load %arg4[%c0_7, %c0_8] : memref<8x128xf32, #tpu.memory_space<vmem>>, vector<8x128xf32>
    tpu.vector_store %arg4[%c0_7, %c0_8], %15 {strides = array<i32>} : memref<8x128xf32, #tpu.memory_space<vmem>>, vector<8x128xf32>,
    return
  }
  func.func @transform_0(%arg0: i32) -> (i32, i32) {
    %c0_i32 = arith.constant 0 : i32
    %c0_i32_0 = arith.constant 0 : i32
    return %arg0, %c0_i32 : i32, i32
  }
  func.func @transform_1(%arg0: i32) -> (i32, i32) {
    %c0_i32 = arith.constant 0 : i32
    %c0_i32_0 = arith.constant 0 : i32
    %c0_i32_1 = arith.constant 0 : i32
    return %c0_i32, %c0_i32_0 : i32, i32
  }
  func.func @transform_2(%arg0: i32) -> (i32, i32) {
    %c0_i32 = arith.constant 0 : i32
    %c0_i32_0 = arith.constant 0 : i32
    %c0_i32_1 = arith.constant 0 : i32
    return %c0_i32, %c0_i32_0 : i32, i32
  }
  func.func @transform_3(%arg0: i32) -> (i32, i32) {
    %c0_i32 = arith.constant 0 : i32
    %c0_i32_0 = arith.constant 0 : i32
    return %arg0, %c0_i32 : i32, i32
  }
}

</mosaic_0001>

<bundles_post_ra>
// kernel: time_moe_temporal_block.1
= control target key start
LH: loop header
LB: loop body
LE: loop exit
PB: predicated region body
PF: predicated region fallthrough
CT: control target
= control target key end

     0   :  { %8 = vsyncpa [#allocation3], 0  ;;  %s865_s0 = inlined_call_operand.vmem [shape: f32[16,128], index: 0, kind: input, shape index: {}]   ;;  %s866_s1 = inlined_call_operand.hbm [shape: bf16[128,256], index: 1, kind: input, shape index: {}]   ;;  %s867_s2 = inlined_call_operand.hbm [shape: bf16[128,128], index: 2, kind: input, shape index: {}]   ;;  %s868_s3 = inlined_call_operand.vmem [shape: f32[16,128], index: 3, kind: output, shape index: {}]  }
   0x1   :  { %9 = vsyncpa [#allocation5], 0  ;;  %s765_s12 = smov 0  }
   0x2 LB: > { %s736_s13 = smov [#allocation2]   ;;  %s771_s15 = sadd.s32 4294967295, %s734_s12   ;;  %s734_s12 = sphi %s765_s12, %s15_s12  }
   0x3   : > { %s126_s14 = sshll.u32 %s736_s13, 4  ;;  %p527_p0 = scmp.ge.s32.totalorder %s734_s12, 1  ;;  %s127_s14 = int_to_ptr.vmem [resolvable:$true] %s126_s14 }
   0x4   : > { %p114_p1 = scmp.lt.s32.totalorder %s734_s12, 3  ;;  %p869_p3 = scmp.eq.s32.totalorder %s771_s15, 0 }
   0x5   : > { %s737_s17 = smov [#allocation4]   ;;  %s664_s22 = scalar_lea.hbm %s866_s1, 2048 }
   0x6   : > { %p775_p2 = pnand %p527_p0, %p114_p1  ;;  %s139_s18 = sshll.u32 %s737_s17, 4  ;;  %s788_s18 = int_to_ptr.vmem [resolvable:$true] %s139_s18 }
   0x7   : > { %p665_p6 = scmp.ne.s32.totalorder %s866_s1, %s664_s22  ;;  %p671_p10 = scmp.lt.u32.totalorder %s664_s22, %s866_s1 }
   0x8   : > { %s871_s16 = scalar_select %p775_p2, 1, 0 }
   0x9   : > { %p600_p4 = pneg %p775_p2 }
   0xb   : > { %p784_p5 = pnand %p869_p3, %p600_p4 }
   0xd   : > { %p666_p7 = pneg %p784_p5 }
   0xf   : > { %p667_p8 = pnand %p666_p7, %p665_p6 }
  0x11   : > { %p668_p9 = pneg %p667_p8 }
  0x13   : > { %p673_p11 = pnand %p671_p10, %p668_p9 }
  0x15   : > { %676 = shalt.err (!%p673_p11)
}
  0x16   : > { %s677_s27 = scalar_lea.vmem %s127_s14, 2048  ;;  %p685_p1 = scmp.lt.s32.totalorder %s127_s14, %s127_s14 }
  0x17   : > { %p678_p12 = scmp.ne.s32.totalorder %s127_s14, %s677_s27  ;;  %p686_p4 = scmp.lt.s32.totalorder %s677_s27, %s677_s27 }
  0x19   : > { %p680_p13 = pnand %p678_p12, %p666_p7  ;;  %p687_p3 = por %p686_p4, %p685_p1 }
  0x1b   : > { %p681_p0 = pneg %p680_p13 }
  0x1d   : > { %p688_p2 = pnand %p687_p3, %p681_p0 }
  0x1f   : > { %691 = shalt.err (!%p688_p2)
}
  0x20   : > { %s738_s28 = smov 128   ;;  %s739_s29 = smov 8  }
  0x21   : > { %603 = dma.hbm_to_vmem [thread:$0]  (!%p784_p5), %s866_s1, 2048, %s127_s14, [#allocation3], %s738_s28, %s738_s28, %s739_s29  }
  0x22   : > { %s692_s7 = scalar_lea.hbm %s867_s2, 1024 }
  0x23   : > { %p693_p6 = scmp.ne.s32.totalorder %s867_s2, %s692_s7  ;;  %p699_p8 = scmp.lt.u32.totalorder %s692_s7, %s867_s2 }
  0x25   : > { %p695_p2 = pnand %p693_p6, %p666_p7 }
  0x27   : > { %p696_p3 = pneg %p695_p2 }
  0x29   : > { %p701_p9 = pnand %p699_p8, %p696_p3 }
  0x2b   : > { %704 = shalt.err (!%p701_p9)
}
  0x2c   : > { %s705_s13 = scalar_lea.vmem %s788_s18, 1024  ;;  %p713_p13 = scmp.lt.s32.totalorder %s788_s18, %s788_s18 }
  0x2d   : > { %p706_p10 = scmp.ne.s32.totalorder %s788_s18, %s705_s13  ;;  %p714_p0 = scmp.lt.s32.totalorder %s705_s13, %s705_s13 }
  0x2f   : > { %p708_p11 = pnand %p706_p10, %p666_p7  ;;  %p715_p1 = por %p714_p0, %p713_p13 }
  0x31   : > { %p709_p12 = pneg %p708_p11 }
  0x33   : > { %p716_p4 = pnand %p715_p1, %p709_p12 }
  0x35   : > { %719 = shalt.err (!%p716_p4)
}
  0x36   : > { %s740_s14 = smov 64   ;;  %s741_s17 = smov 4  }
  0x37   : > { %606 = dma.hbm_to_vmem [thread:$0]  (!%p784_p5), %s867_s2, 1024, %s788_s18, [#allocation5], %s740_s14, %s740_s14, %s741_s17  }
  0x38   : > { %p873_p6 = scmp.ne.s32.totalorder %s871_s16, 0 }
  0x39   : > { %p874_p7 = scmp.eq.s32.totalorder (!%p873_p6), %s771_s15, 0 }
  0x3a   : > { %162 = sbr.rel (%p873_p6) target bundleno = 562 (0x232), region = 32 }
  0x41   : > { %725 = dma.done.wait (%p874_p7), [#allocation3], 2048   ;;  %p875_p2 = pmov %p874_p7 }
  0x43   : > { %727 = vsyncadd (%p875_p2), [#allocation3], 4294965248  ;;  %p876_p3 = pmov %p875_p2 }
  0x44   : > { %p877_p8 = pmov %p875_p2 }
  0x45   : > { %729 = dma.done.wait (%p876_p3), [#allocation5], 1024  }
  0x46   : > { %731 = vsyncadd (%p877_p8), [#allocation5], 4294966272  ;;  %v742_v0 = vmov 0   ;;  %v628_v1 = vld [vmem:[#allocation2 + $0x4] ss:$8 sps:$4 sm:$0xff]   ;;  %p188_p5 = scmp.lt.s32.totalorder %s771_s15, 1 }
  0x47   : > { %327 = vmatprep.mubr.bf16.mxu0 %v742_v0  ;;  %v630_v2 = vld [vmem:[#allocation2] ss:$8 sps:$4 sm:$0xff]   ;;  %295 = vmatprep.subr.bf16.mxu0 %v628_v1  ;;  %v631_v3 = vld [vmem:[#allocation2 + $0x14] ss:$8 sps:$4 sm:$0xff]   ;;  %v633_v4 = vld [vmem:[#allocation2 + $0x10] ss:$8 sps:$4 sm:$0xff]  }
  0x48   : > { %296 = vmatpush1.bf16.msra.mxu0 %v630_v2  ;;  %v634_v5 = vld [vmem:[#allocation2 + $0x24] ss:$8 sps:$4 sm:$0xff]   ;;  %v636_v6 = vld [vmem:[#allocation2 + $0x20] ss:$8 sps:$4 sm:$0xff]   ;;  %v637_v7 = vld [vmem:[#allocation2 + $0x34] ss:$8 sps:$4 sm:$0xff]  }
  0x49   : > { %297 = vmatprep.subr.bf16.mxu0 %v631_v3  ;;  %v639_v8 = vld [vmem:[#allocation2 + $0x30] ss:$8 sps:$4 sm:$0xff]   ;;  %v640_v9 = vld [vmem:[#allocation2 + $0x44] ss:$8 sps:$4 sm:$0xff]   ;;  %v642_v10 = vld [vmem:[#allocation2 + $0x40] ss:$8 sps:$4 sm:$0xff]  }
  0x4a   : > { %v643_v11 = vld [vmem:[#allocation2 + $0x54] ss:$8 sps:$4 sm:$0xff]   ;;  %s879_s15 = smov (!%p188_p5, %s771_s15), 1  ;;  %v645_v12 = vld [vmem:[#allocation2 + $0x50] ss:$8 sps:$4 sm:$0xff]   ;;  %v652_v19 = vld [vmem:[#allocation4] sm:$0xff]  }
  0x4b   : > { %v646_v13 = vld [vmem:[#allocation2 + $0x64] ss:$8 sps:$4 sm:$0xff]   ;;  %s534_s16 = sshll.u32 %s879_s15, 3  ;;  %v648_v14 = vld [vmem:[#allocation2 + $0x60] ss:$8 sps:$4 sm:$0xff]   ;;  %v743_v20 = vmov 0.0  }
  0x4c   : > { %298 = vmatpush1.bf16.msra.mxu0 %v633_v4  ;;  %v649_v15 = vld [vmem:[#allocation2 + $0x74] ss:$8 sps:$4 sm:$0xff]   ;;  %s191_s22 = scalar_lea.vmem %s865_s0, %s534_s16  ;;  %v651_v16 = vld [vmem:[#allocation2 + $0x70] ss:$8 sps:$4 sm:$0xff]   ;;  %572 = vmatprep.subr.bf16.mxu1 %v743_v20  ;;  %v653_v21 = vld [vmem:[#allocation4 + $0x8] sm:$0xff]   ;;  %vm744_vm0 = vmmov 0   ;;  %s195_s25 = scalar_lea.vmem %s868_s3, %s534_s16 }
  0x4d   : > { %299 = vmatprep.subr.bf16.mxu0 %v634_v5  ;;  %v197_v17 = vld [vmem:[%s191_s22] sm:$0xff]  ;;  %573 = vmatpush3.bf16.msra.mxu1 %v652_v19  ;;  %v654_v22 = vld [vmem:[#allocation4 + $0x10] sm:$0xff]   ;;  %v655_v23 = vld [vmem:[#allocation4 + $0x18] sm:$0xff]  }
  0x4e   : > { %v198_v18 = vpack.c.bf16 %v197_v17, %v197_v17  ;;  %574 = vmatprep.subr.bf16.mxu1 %v743_v20  ;;  %v656_v24 = vld [vmem:[#allocation4 + $0x20] sm:$0xff]   ;;  %v657_v25 = vld [vmem:[#allocation4 + $0x28] sm:$0xff]   ;;  %v658_v26 = vld [vmem:[#allocation4 + $0x30] sm:$0xff]   ;;  %588 = vmatprep.mubr.msk.bf16.mxu1 %vm744_vm0, %v743_v20 }
  0x4f   : > { %v659_v27 = vld [vmem:[#allocation4 + $0x38] sm:$0xff]  }
  0x50   : > { %300 = vmatpush1.bf16.msra.mxu0 %v636_v6 }
  0x51   : > { %301 = vmatprep.subr.bf16.mxu0 %v637_v7  ;;  %575 = vmatpush3.bf16.msra.mxu1 %v653_v21 }
  0x52   : > { %576 = vmatprep.subr.bf16.mxu1 %v743_v20 }
  0x54   : > { %302 = vmatpush1.bf16.msra.mxu0 %v639_v8 }
  0x55   : > { %303 = vmatprep.subr.bf16.mxu0 %v640_v9  ;;  %577 = vmatpush3.bf16.msra.mxu1 %v654_v22 }
  0x56   : > { %578 = vmatprep.subr.bf16.mxu1 %v743_v20 }
  0x58   : > { %304 = vmatpush1.bf16.msra.mxu0 %v642_v10 }
  0x59   : > { %305 = vmatprep.subr.bf16.mxu0 %v643_v11  ;;  %579 = vmatpush3.bf16.msra.mxu1 %v655_v23 }
  0x5a   : > { %580 = vmatprep.subr.bf16.mxu1 %v743_v20 }
  0x5c   : > { %306 = vmatpush1.bf16.msra.mxu0 %v645_v12 }
  0x5d   : > { %307 = vmatprep.subr.bf16.mxu0 %v646_v13  ;;  %581 = vmatpush3.bf16.msra.mxu1 %v656_v24 }
  0x5e   : > { %582 = vmatprep.subr.bf16.mxu1 %v743_v20 }
  0x60   : > { %308 = vmatpush1.bf16.msra.mxu0 %v648_v14 }
  0x61   : > { %309 = vmatprep.subr.bf16.mxu0 %v649_v15  ;;  %583 = vmatpush3.bf16.msra.mxu1 %v657_v25 }
  0x62   : > { %584 = vmatprep.subr.bf16.mxu1 %v743_v20 }
  0x64   : > { %310 = vmatpush1.bf16.msra.mxu0 %v651_v16 }
  0x65   : > { %585 = vmatpush3.bf16.msra.mxu1 %v658_v26 }
  0x66   : > { %586 = vmatprep.subr.bf16.mxu1 %v743_v20 }
  0x67   : > { %328 = vmatmul.mubr.bf16.vlgmr.msra.gmra.mrb[0].mxu0 %v198_v18 }
  0x69   : > { %587 = vmatpush3.bf16.msra.mxu1 %v659_v27 }
 0x13a   : > { %v329_v28 = vpop.f32.mrb[0].mxu0 }
 0x13b   : > { %v552_v29 = vmul.f32 -1.442695, %v329_v28  ;;  %v331_v30 = vpop.f32.mrb[1].mxu0 }
 0x13c   : > { %v333_v31 = vpop.f32.mrb[2].mxu0 }
 0x13d   : > { %660 = vpow2.f32 %v552_v29  ;;  %v334_v32 = vpop.f32.mrb[3].mxu0 }
 0x147   : > { %v661_v33 = vpop.eup %660 }
 0x148   : > { %v339_v34 = vadd.f32 1.0, %v661_v33 }
 0x14a   : > { %662 = vrcp.f32 %v339_v34 }
 0x154   : > { %v663_v35 = vpop.eup %662 }
 0x155   : > { %v342_v36 = vmul.f32 %v663_v35, %v329_v28 }
 0x157   : > { %v343_v37 = vmul.f32 %v342_v36, %v331_v30 }
 0x159   : > { %v344_v38 = vpack.c.bf16 %v343_v37, %v343_v37 }
 0x15b   : > { %589 = vmatmul.mubr.bf16.vlgmr.msra.gmra.mrb[0].mxu1 %v344_v38 }
 0x22e   : > { %v443_v39 = vpop.f32.mrb[0].mxu1 }
 0x22f   : > { %449 = vst [vmem:[%s195_s25] sm:$0xff] %v443_v39  ;;  %v590_v40 = vpop.f32.mrb[1].mxu1 }
 0x230   : > { %v446_v41 = vpop.f32.mrb[2].mxu1 }
 0x231   : > { %v591_v42 = vpop.f32.mrb[3].mxu1 }
 0x232 PF: > { %s15_s12 = sadd.s32 1, %s734_s12  }
 0x233   : > { %p12_p9 = scmp.ge.s32.totalorder %s15_s12, 4  }
 0x235   :  { %14 = sbr.rel (!%p12_p9) target bundleno = 2 (0x2), region = 71 }
 0x23c   :  { %469 = vsyncpa [#allocation3], 1 }
 0x23d   :  { %471 = vsyncpa [#allocation3 + $0x1], 1 }
 0x23e   :  { %472 = vsyncpa [#allocation5], 1 }

</bundles_post_ra>
